<compile_context>
chip_gen: v7x
topology: tpu7x:2x2x1
jax: 0.10.0
libtpu: 0.0.40
codegen_flags: <defaults>
</compile_context>

<pallas_src>
import jax
import jax.numpy as jnp
from jax.experimental import pallas as pl
from jax.experimental.pallas import tpu as pltpu

_SUB = 8            # f32 sublane width (second-to-last dim alignment)
_TILE_B_MAX = 2048  # batch rows per grid step (VMEM-safe on v5e/v6e/v7x)


def _round_up(x, m):
    return ((x + m - 1) // m) * m


def _qnetwork_kernel(x_ref, w1_ref, b1_ref, w2_ref, b2_ref, w3_ref, b3_ref, out_ref):
    # x_ref:  (tile_b, S) f32     w1_ref: (S, 64)   b1_ref: (8, 64)  f32
    # w2_ref: (64, 64)            b2_ref: (8, 64)   f32
    # w3_ref: (64, A)             b3_ref: (8, A)    f32
    # out_ref: (tile_b, A) f32
    cdt = w1_ref.dtype              # compute dtype comes from the weights
    x = x_ref[...].astype(cdt)      # in-kernel cast (no extra HBM pass)

    # fc1 + relu (f32 accumulate, f32 epilogue)
    h1 = jnp.dot(x, w1_ref[...], preferred_element_type=jnp.float32) + b1_ref[0:1, :]
    h1 = jnp.maximum(h1, 0.0).astype(cdt)

    # fc2 + relu
    h2 = jnp.dot(h1, w2_ref[...], preferred_element_type=jnp.float32) + b2_ref[0:1, :]
    h2 = jnp.maximum(h2, 0.0).astype(cdt)

    # fc3 (no activation) -> unpadded lane-narrow store (negligible; HBM-bound kernel)
    out = jnp.dot(h2, w3_ref[...], preferred_element_type=jnp.float32) + b3_ref[0:1, :]
    out_ref[...] = out.astype(out_ref.dtype)


def qnetwork_forward(state, params, *, compute_dtype=jnp.float32,
                     tile_b_max=_TILE_B_MAX, use_pallas=True):
    """Fused QNetwork forward pass.

    state: (B, state_size) float32
    params: dict with w1 (S,64), b1 (1,64), w2 (64,64), b2 (1,64), w3 (64,A), b3 (1,A)
    compute_dtype: jnp.float32 (exact, recommended on v5e) or jnp.bfloat16
      (weights cast once in the wrapper, x cast inside the kernel).
    use_pallas: for tiny inference batches (B <~ 256) a plain XLA path is just
      as fast; set use_pallas=False to skip the pallas_call entirely.
    returns: (B, action_size) float32
    """
    if not use_pallas:
        return qnetwork_ref(state, params)

    w1, b1 = params["w1"], params["b1"].reshape(1, -1)
    w2, b2 = params["w2"], params["b2"].reshape(1, -1)
    w3, b3 = params["w3"], params["b3"].reshape(1, -1)

    B, S = state.shape
    H1, H2, A = w1.shape[1], w2.shape[1], w3.shape[1]

    # Batch tiling: multiple of 8 sublanes; aim for >= 2 grid steps whenever
    # possible so "parallel" can shard across both TensorCores on v7x.
    if B <= tile_b_max:
        half = _round_up(-(-B // 2), _SUB)
        tile_b = half if half < B else B        # B<=8: single full-extent block
    else:
        tile_b = tile_b_max
    nb = -(-B // tile_b)                        # partial last block handled by Pallas

    # Weights: one-time tiny cast to the compute dtype. Biases stay f32 and are
    # passed as aligned (8, N) tiles (epilogue math stays f32).
    w1_c = w1.astype(compute_dtype)
    w2_c = w2.astype(compute_dtype)
    w3_c = w3.astype(compute_dtype)
    b1_t = jnp.broadcast_to(b1.astype(jnp.float32), (_SUB, H1))
    b2_t = jnp.broadcast_to(b2.astype(jnp.float32), (_SUB, H2))
    b3_t = jnp.broadcast_to(b3.astype(jnp.float32), (_SUB, A))

    return pl.pallas_call(
        _qnetwork_kernel,
        out_shape=jax.ShapeDtypeStruct((B, A), jnp.float32),
        grid=(nb,),
        in_specs=[
            pl.BlockSpec((tile_b, S), lambda i: (i, 0)),   # x: blocked over batch
            pl.BlockSpec((S, H1), lambda i: (0, 0)),       # w1: VMEM-resident
            pl.BlockSpec((_SUB, H1), lambda i: (0, 0)),    # b1: resident
            pl.BlockSpec((H1, H2), lambda i: (0, 0)),      # w2: resident
            pl.BlockSpec((_SUB, H2), lambda i: (0, 0)),    # b2: resident
            pl.BlockSpec((H2, A), lambda i: (0, 0)),       # w3: resident
            pl.BlockSpec((_SUB, A), lambda i: (0, 0)),     # b3: resident
        ],
        out_specs=pl.BlockSpec((tile_b, A), lambda i: (i, 0)),  # unpadded store
        compiler_params=pltpu.CompilerParams(
            dimension_semantics=("parallel",),  # shards batch tiles across TCs on v7x
        ),
    )(state, w1_c, b1_t, w2_c, b2_t, w3_c, b3_t)


def init_qnetwork_params(state_size, action_size, seed=0):
    """Deterministic init mimicking nn.Linear's U(-1/sqrt(fan_in), 1/sqrt(fan_in))."""
    key = jax.random.PRNGKey(seed)
    ks = jax.random.split(key, 6)

    def linear_init(kw, kb, fan_in, fan_out):
        bound = 1.0 / jnp.sqrt(jnp.float32(fan_in))
        w = jax.random.uniform(kw, (fan_in, fan_out), jnp.float32, -bound, bound)
        b = jax.random.uniform(kb, (1, fan_out), jnp.float32, -bound, bound)
        return w, b

    w1, b1 = linear_init(ks[0], ks[1], state_size, 64)
    w2, b2 = linear_init(ks[2], ks[3], 64, 64)
    w3, b3 = linear_init(ks[4], ks[5], 64, action_size)
    return {"w1": w1, "b1": b1, "w2": w2, "b2": b2, "w3": w3, "b3": b3}


def qnetwork_ref(state, params):
    """Pure-JAX reference for correctness checking."""
    h1 = jnp.maximum(state @ params["w1"] + params["b1"], 0.0)
    h2 = jnp.maximum(h1 @ params["w2"] + params["b2"], 0.0)
    return h2 @ params["w3"] + params["b3"]


if __name__ == "__main__":
    state_size = 8
    action_size = 4
    batch = 8

    params = init_qnetwork_params(state_size, action_size, seed=0)

    key = jax.random.PRNGKey(0)
    state = jax.random.normal(key, (batch, state_size), dtype=jnp.float32)

    # f32 path, small batch (single full-extent block)
    out = jax.block_until_ready(qnetwork_forward(state, params))
    ref = qnetwork_ref(state, params)
    assert out.shape == (batch, action_size)
    assert jnp.allclose(out, ref, atol=1e-5, rtol=1e-5), "f32 mismatch vs reference"

    # bf16 compute path (weights cast once in wrapper, x cast in-kernel)
    out_bf16 = jax.block_until_ready(
        qnetwork_forward(state, params, compute_dtype=jnp.bfloat16))
    assert out_bf16.shape == (batch, action_size)
    assert jnp.allclose(out_bf16, ref, atol=1e-1, rtol=1e-1), "bf16 mismatch vs reference"

    # Larger, non-multiple batch: exercises multi-step grid, partial final
    # block, and the >=2-grid-step split (tile_b=520, nb=2).
    big_state = jax.random.normal(jax.random.PRNGKey(1), (1029, state_size), jnp.float32)
    out_big = jax.block_until_ready(qnetwork_forward(big_state, params))
    ref_big = qnetwork_ref(big_state, params)
    assert out_big.shape == (1029, action_size)
    assert jnp.allclose(out_big, ref_big, atol=1e-4, rtol=1e-4), "big-batch mismatch"

    print("KERNEL_OK")
</pallas_src>

<mosaic_0001>
module attributes {stable_mosaic.version = 11 : i64} {
  func.func @_qnetwork_kernel(%arg0: i32, %arg1: memref<8x8xf32, #tpu.memory_space<vmem>>, %arg2: memref<8x64xf32, #tpu.memory_space<vmem>>, %arg3: memref<8x64xf32, #tpu.memory_space<vmem>>, %arg4: memref<64x64xf32, #tpu.memory_space<vmem>>, %arg5: memref<8x64xf32, #tpu.memory_space<vmem>>, %arg6: memref<64x4xf32, #tpu.memory_space<vmem>>, %arg7: memref<8x4xf32, #tpu.memory_space<vmem>>, %arg8: memref<8x4xf32, #tpu.memory_space<vmem>>) attributes {dimension_semantics = [#tpu.dimension_semantics<parallel>], iteration_bounds = array<i64: 1>, scalar_prefetch = 0 : i64, scratch_operands = 0 : i64, tpu.core_type = #tpu.core_type<tc>, window_params = [{transform_indices = @transform_0, window_bounds = array<i64: 8, 8>}, {pipeline_mode = #tpu.pipeline_mode<synchronous>, transform_indices = @transform_1, window_bounds = array<i64: 8, 64>}, {pipeline_mode = #tpu.pipeline_mode<synchronous>, transform_indices = @transform_2, window_bounds = array<i64: 8, 64>}, {pipeline_mode = #tpu.pipeline_mode<synchronous>, transform_indices = @transform_3, window_bounds = array<i64: 64, 64>}, {pipeline_mode = #tpu.pipeline_mode<synchronous>, transform_indices = @transform_4, window_bounds = array<i64: 8, 64>}, {pipeline_mode = #tpu.pipeline_mode<synchronous>, transform_indices = @transform_5, window_bounds = array<i64: 64, 4>}, {pipeline_mode = #tpu.pipeline_mode<synchronous>, transform_indices = @transform_6, window_bounds = array<i64: 8, 4>}, {transform_indices = @transform_7, window_bounds = array<i64: 8, 4>}]} {
    %c0 = arith.constant 0 : index
    %c0_0 = arith.constant 0 : index
    %0 = vector.load %arg1[%c0, %c0_0] : memref<8x8xf32, #tpu.memory_space<vmem>>, vector<8x8xf32>
    %c0_1 = arith.constant 0 : index
    %c0_2 = arith.constant 0 : index
    %1 = vector.load %arg2[%c0_1, %c0_2] : memref<8x64xf32, #tpu.memory_space<vmem>>, vector<8x64xf32>
    %cst = arith.constant dense<0.000000e+00> : vector<8x64xf32>
    %2 = tpu.matmul %0, %1, %cst {dimension_numbers = #tpu.dot_dimension_numbers<[1], [0], [0], [1], [0, 0, 1, 1], [], []>} : vector<8x8xf32>, vector<8x64xf32>, vector<8x64xf32> -> vector<8x64xf32>
    %c0_3 = arith.constant 0 : index
    %c0_4 = arith.constant 0 : index
    %3 = vector.load %arg3[%c0_3, %c0_4] : memref<8x64xf32, #tpu.memory_space<vmem>>, vector<1x64xf32>
    %4 = vector.broadcast %3 : vector<1x64xf32> to vector<8x64xf32>
    %5 = arith.addf %2, %4 : vector<8x64xf32>
    %cst_5 = arith.constant 0.000000e+00 : f32
    %6 = vector.broadcast %cst_5 : f32 to vector<8x64xf32>
    %7 = arith.maximumf %5, %6 : vector<8x64xf32>
    %c0_6 = arith.constant 0 : index
    %c0_7 = arith.constant 0 : index
    %8 = vector.load %arg4[%c0_6, %c0_7] : memref<64x64xf32, #tpu.memory_space<vmem>>, vector<64x64xf32>
    %cst_8 = arith.constant dense<0.000000e+00> : vector<8x64xf32>
    %9 = tpu.matmul %7, %8, %cst_8 {dimension_numbers = #tpu.dot_dimension_numbers<[1], [0], [0], [1], [0, 0, 1, 1], [], []>} : vector<8x64xf32>, vector<64x64xf32>, vector<8x64xf32> -> vector<8x64xf32>
    %c0_9 = arith.constant 0 : index
    %c0_10 = arith.constant 0 : index
    %10 = vector.load %arg5[%c0_9, %c0_10] : memref<8x64xf32, #tpu.memory_space<vmem>>, vector<1x64xf32>
    %11 = vector.broadcast %10 : vector<1x64xf32> to vector<8x64xf32>
    %12 = arith.addf %9, %11 : vector<8x64xf32>
    %cst_11 = arith.constant 0.000000e+00 : f32
    %13 = vector.broadcast %cst_11 : f32 to vector<8x64xf32>
    %14 = arith.maximumf %12, %13 : vector<8x64xf32>
    %c0_12 = arith.constant 0 : index
    %c0_13 = arith.constant 0 : index
    %15 = vector.load %arg6[%c0_12, %c0_13] : memref<64x4xf32, #tpu.memory_space<vmem>>, vector<64x4xf32>
    %cst_14 = arith.constant dense<0.000000e+00> : vector<8x4xf32>
    %16 = tpu.matmul %14, %15, %cst_14 {dimension_numbers = #tpu.dot_dimension_numbers<[1], [0], [0], [1], [0, 0, 1, 1], [], []>} : vector<8x64xf32>, vector<64x4xf32>, vector<8x4xf32> -> vector<8x4xf32>
    %c0_15 = arith.constant 0 : index
    %c0_16 = arith.constant 0 : index
    %17 = vector.load %arg7[%c0_15, %c0_16] : memref<8x4xf32, #tpu.memory_space<vmem>>, vector<1x4xf32>
    %18 = vector.broadcast %17 : vector<1x4xf32> to vector<8x4xf32>
    %19 = arith.addf %16, %18 : vector<8x4xf32>
    %c0_17 = arith.constant 0 : index
    %c0_18 = arith.constant 0 : index
    %20 = vector.load %arg8[%c0_17, %c0_18] : memref<8x4xf32, #tpu.memory_space<vmem>>, vector<8x4xf32>
    tpu.vector_store %arg8[%c0_17, %c0_18], %19 {strides = array<i32>} : memref<8x4xf32, #tpu.memory_space<vmem>>, vector<8x4xf32>,
    return
  }
  func.func @transform_0(%arg0: i32) -> (i32, i32) {
    %c0_i32 = arith.constant 0 : i32
    %c0_i32_0 = arith.constant 0 : i32
    return %arg0, %c0_i32 : i32, i32
  }
  func.func @transform_1(%arg0: i32) -> (i32, i32) {
    %c0_i32 = arith.constant 0 : i32
    %c0_i32_0 = arith.constant 0 : i32
    %c0_i32_1 = arith.constant 0 : i32
    return %c0_i32, %c0_i32_0 : i32, i32
  }
  func.func @transform_2(%arg0: i32) -> (i32, i32) {
    %c0_i32 = arith.constant 0 : i32
    %c0_i32_0 = arith.constant 0 : i32
    %c0_i32_1 = arith.constant 0 : i32
    return %c0_i32, %c0_i32_0 : i32, i32
  }
  func.func @transform_3(%arg0: i32) -> (i32, i32) {
    %c0_i32 = arith.constant 0 : i32
    %c0_i32_0 = arith.constant 0 : i32
    %c0_i32_1 = arith.constant 0 : i32
    return %c0_i32, %c0_i32_0 : i32, i32
  }
  func.func @transform_4(%arg0: i32) -> (i32, i32) {
    %c0_i32 = arith.constant 0 : i32
    %c0_i32_0 = arith.constant 0 : i32
    %c0_i32_1 = arith.constant 0 : i32
    return %c0_i32, %c0_i32_0 : i32, i32
  }
  func.func @transform_5(%arg0: i32) -> (i32, i32) {
    %c0_i32 = arith.constant 0 : i32
    %c0_i32_0 = arith.constant 0 : i32
    %c0_i32_1 = arith.constant 0 : i32
    return %c0_i32, %c0_i32_0 : i32, i32
  }
  func.func @transform_6(%arg0: i32) -> (i32, i32) {
    %c0_i32 = arith.constant 0 : i32
    %c0_i32_0 = arith.constant 0 : i32
    %c0_i32_1 = arith.constant 0 : i32
    return %c0_i32, %c0_i32_0 : i32, i32
  }
  func.func @transform_7(%arg0: i32) -> (i32, i32) {
    %c0_i32 = arith.constant 0 : i32
    %c0_i32_0 = arith.constant 0 : i32
    return %arg0, %c0_i32 : i32, i32
  }
}

</mosaic_0001>

<bundles_post_ra>
// kernel: tpu_custom_call.1
= control target key start
LH: loop header
LB: loop body
LE: loop exit
PB: predicated region body
PF: predicated region fallthrough
CT: control target
= control target key end

     0   :  { %12 = vsyncpa [#allocation3], 0  ;;  %s422_s24 = smov [#allocation2]   ;;  %s544_s0 = inlined_call_operand.vmem [shape: f32[8,8], index: 0, kind: input, shape index: {}]   ;;  %s545_s1 = inlined_call_operand.vmem [shape: f32[8,64], index: 1, kind: input, shape index: {}]   ;;  %s546_s2 = inlined_call_operand.vmem [shape: f32[8,64], index: 2, kind: input, shape index: {}]   ;;  %s547_s3 = inlined_call_operand.vmem [shape: f32[64,64], index: 3, kind: input, shape index: {}]   ;;  %s548_s4 = inlined_call_operand.hbm [shape: f32[8,64], index: 4, kind: input, shape index: {}]   ;;  %s549_s5 = inlined_call_operand.vmem [shape: f32[64,4], index: 5, kind: input, shape index: {}]   ;;  %s550_s6 = inlined_call_operand.vmem [shape: f32[8,4], index: 6, kind: input, shape index: {}]   ;;  %s551_s7 = inlined_call_operand.vmem [shape: f32[8,4], index: 7, kind: output, shape index: {}]  }
   0x1   :  { %s27_s25 = sshll.u32 %s422_s24, 4  ;;  %s398_s28 = scalar_lea.hbm %s548_s4, 128  ;;  %s28_s25 = int_to_ptr.vmem [resolvable:$true] %s27_s25 }
   0x2   :  { %p399_p0 = scmp.ne.s32.totalorder %s548_s4, %s398_s28  ;;  %p402_p1 = scmp.lt.u32.totalorder %s398_s28, %s548_s4 }
   0x4   :  { %p404_p2 = pnand %p402_p1, %p399_p0 }
   0x6   :  { %407 = shalt.err (!%p404_p2)
}
   0x7   :  { %s408_s10 = scalar_lea.vmem %s28_s25, 128  ;;  %p413_p4 = scmp.lt.s32.totalorder %s28_s25, %s28_s25 }
   0x8   :  { %p409_p3 = scmp.ne.s32.totalorder %s28_s25, %s408_s10  ;;  %p414_p5 = scmp.lt.s32.totalorder %s408_s10, %s408_s10 }
   0xa   :  { %p415_p6 = por %p414_p5, %p413_p4 }
   0xc   :  { %p416_p7 = pnand %p415_p6, %p409_p3 }
   0xe   :  { %419 = shalt.err (!%p416_p7)
}
   0xf   :  { %30 = dma.hbm_to_vmem [thread:$0]  %s548_s4, 128, %s28_s25, [#allocation3]  }
  0x10   :  { %420 = dma.done.wait [#allocation3], 128  }
  0x11   :  { %421 = vsyncadd [#allocation3], 4294967168  ;;  %v423_v0 = vmov 0.0   ;;  %vm424_vm0 = vmmov 0   ;;  %v425_v1 = vmov 0.0|0.0   ;;  %vm45_vm1 = vcmask 64512  }
  0x12   :  { %327 = vmatprep.subr.mxu0 %v423_v0  ;;  %329 = vmatprep.mubr.msk.f32.mxu0 %vm424_vm0, %v423_v0  ;;  %v39_v2 = vld [vmem:[%s545_s1] sm:$0xff]  ;;  %v121_v5 = vld [vmem:[%s547_s3 + $0x8] sm:$0xff]  ;;  %v122_v6 = vld [vmem:[%s547_s3 + $0x10] sm:$0xff]  ;;  %vm133_vm2 = vcmask 523264   ;;  %vm294_vm3 = vcmask 31744  }
  0x13   :  { %370 = vmatprep.subr.bf16.mxu1 %v425_v1  ;;  %348 = vmatprep.mubr.msk.f32.mxu1 %vm424_vm0, %v423_v0  ;;  %v38_v3 = vld [vmem:[%s544_s0] sm:$0xff]  ;;  %v123_v7 = vld [vmem:[%s547_s3 + $0x18] sm:$0xff]  ;;  %v125_v11 = vld [vmem:[%s547_s3 + $0x28] sm:$0xff] }
  0x14   :  { %v120_v4 = vld [vmem:[%s547_s3] sm:$0xff]  ;;  %328 = vmatpush3.msra.mxu0 %v39_v2  ;;  %v374_v9 = vpack.c.bf16 %v123_v7, %v122_v6  ;;  %v126_v13 = vld [vmem:[%s547_s3 + $0x30] sm:$0xff]  ;;  %v127_v14 = vld [vmem:[%s547_s3 + $0x38] sm:$0xff] }
  0x15   :  { %330 = vmatmul.mubr.msk.f32.vlgmr.msra.gmra.mrb[0].mxu0 %vm45_vm1, %v38_v3  ;;  %v371_v8 = vpack.c.bf16 %v121_v5, %v120_v4  ;;  %382 = vmatprep.subr.bf16.mxu0 %v425_v1  ;;  %v124_v10 = vld [vmem:[%s547_s3 + $0x20] sm:$0xff]  ;;  %v380_v15 = vpack.c.bf16 %v127_v14, %v126_v13  ;;  %v209_v17 = vld [vmem:[%s549_s5 + $0x8] sm:$0xff]  ;;  %v210_v18 = vld [vmem:[%s549_s5 + $0x10] sm:$0xff] }
  0x16   :  { %367 = vmatprep.mubr.msk.f32.mxu0 %vm424_vm0, %v423_v0  ;;  %v377_v12 = vpack.c.bf16 %v125_v11, %v124_v10  ;;  %v208_v16 = vld [vmem:[%s549_s5] sm:$0xff]  ;;  %v211_v20 = vld [vmem:[%s549_s5 + $0x18] sm:$0xff]  ;;  %v213_v23 = vld [vmem:[%s549_s5 + $0x28] sm:$0xff] }
  0x17   :  { %372 = vmatpush3.bf16.msra.mxu1 %v371_v8  ;;  %v383_v19 = vpack.c.bf16 %v209_v17, %v208_v16  ;;  %v386_v21 = vpack.c.bf16 %v211_v20, %v210_v18  ;;  %v212_v22 = vld [vmem:[%s549_s5 + $0x20] sm:$0xff]  ;;  %v214_v30 = vld [vmem:[%s549_s5 + $0x30] sm:$0xff]  ;;  %v215_v31 = vld [vmem:[%s549_s5 + $0x38] sm:$0xff] }
  0x18   :  { %373 = vmatprep.subr.bf16.mxu1 %v425_v1  ;;  %v389_v24 = vpack.c.bf16 %v213_v23, %v212_v22  ;;  %v301_v25 = vld [vmem:[%s546_s2] ss:$0 sm:$0xff]  ;;  %v392_v32 = vpack.c.bf16 %v215_v31, %v214_v30 }
  0x19   :  { %384 = vmatpush3.bf16.msra.mxu0 %v383_v19  ;;  %v303_v33 = vld [vmem:[#allocation2] ss:$0 sm:$0xff] }
  0x1a   :  { %385 = vmatprep.subr.bf16.mxu0 %v425_v1  ;;  %v305_v38 = vld [vmem:[%s550_s6] ss:$0 sm:$0xff] }
  0x1b   :  { %375 = vmatpush3.bf16.msra.mxu1 %v374_v9 }
  0x1c   :  { %376 = vmatprep.subr.bf16.mxu1 %v425_v1 }
  0x1d   :  { %387 = vmatpush3.bf16.msra.mxu0 %v386_v21 }
  0x1e   :  { %388 = vmatprep.subr.bf16.mxu0 %v425_v1 }
  0x1f   :  { %378 = vmatpush3.bf16.msra.mxu1 %v377_v12 }
  0x20   :  { %379 = vmatprep.subr.bf16.mxu1 %v425_v1 }
  0x21   :  { %390 = vmatpush3.bf16.msra.mxu0 %v389_v24 }
  0x22   :  { %391 = vmatprep.subr.bf16.mxu0 %v425_v1 }
  0x23   :  { %381 = vmatpush3.bf16.msra.mxu1 %v380_v15 }
  0x25   :  { %393 = vmatpush3.bf16.msra.mxu0 %v392_v32 }
  0xe8   :  { %v115_v26 = vpop.f32.mrb[0].mxu0 }
  0xe9   :  { %v116_v27 = vadd.f32 %v301_v25, %v115_v26  ;;  %v331_v28 = vpop.f32.mrb[1].mxu0 }
  0xeb   :  { %v119_v29 = vmax.f32 %v116_v27, 0.0 }
  0xed   :  { %349 = vmatmul.mubr.msk.f32.vlgmr.msra.gmra.mrb[0].mxu1 %vm133_vm2, %v119_v29 }
 0x1c0   :  { %v203_v34 = vpop.f32.mrb[0].mxu1 }
 0x1c1   :  { %v204_v35 = vadd.f32 %v303_v33, %v203_v34  ;;  %v350_v36 = vpop.f32.mrb[1].mxu1 }
 0x1c3   :  { %v207_v37 = vmax.f32 %v204_v35, 0.0 }
 0x1c5   :  { %368 = vmatmul.mubr.msk.f32.vlgmr.msra.gmra.mrb[2].mxu0 %vm133_vm2, %v207_v37 }
 0x298   :  { %v290_v39 = vpop.f32.mrb[2].mxu0 }
 0x299   :  { %v291_v40 = vadd.f32 %v305_v38, %v290_v39  ;;  %v369_v41 = vpop.f32.mrb[3].mxu0 }
 0x29b   :  { %295 = vst.msk [vmem:[%s551_s7] sm:$0xff] %vm294_vm3, %v291_v40 }
 0x29c   :  { %300 = vsyncpa [#allocation3], 1 }

</bundles_post_ra>
